<compile_context>
chip_gen: v6e
topology: v6e:2x2x1
jax: 0.10.0
libtpu: 0.0.40
codegen_flags: <defaults>
</compile_context>

<pallas_src>
import functools

import jax
import jax.numpy as jnp
from jax.experimental import pallas as pl
from jax.experimental.pallas import tpu as pltpu

_LANE = 128


def _round_up(x, m):
    return ((x + m - 1) // m) * m


def _physical_vmem_bytes(default=64 * 1024 * 1024):
    """Physical VMEM per TensorCore (128 MiB on v5e/v6e, 64 MiB on v7x).

    Falls back to the most conservative value (64 MiB) if the trace-time
    query is unavailable, which is safe on every generation.
    """
    try:
        info = pltpu.get_tpu_info()
        cap = getattr(info, "vmem_capacity_bytes", None)
        if cap:
            return int(cap)
    except Exception:  # defensive: never fail the build over a perf query
        pass
    return default


def _resdowns_kernel(x_ref, w_ref, shift_ref, o_ref):
    # x_ref:     (C_in, TM)    spatial tile of one image, channels on sublanes
    # w_ref:     (C_out, C_in) BN-scale-folded 1x1-conv weight (resident)
    # shift_ref: (C_out, 1)    folded BN shift = beta - mean * scale (resident)
    # o_ref:     (C_out, TM)
    y = jnp.dot(w_ref[...], x_ref[...], preferred_element_type=jnp.float32)
    o_ref[...] = (y + shift_ref[...]).astype(o_ref.dtype)


def _conv1x1_bn(x_flat, w_folded, shift, *, tm, out_dtype, vmem_limit_bytes):
    # x_flat: (N, C_in, HW)   w_folded: (C_out, C_in)   shift: (C_out, 1)
    n, c_in, hw = x_flat.shape
    c_out = w_folded.shape[0]
    # Non-divisible HW is handled by Pallas masking of the partial last block:
    # no wrapper-side pad of x or slice of y (each would be an extra full HBM
    # round trip of the activation).
    grid = (n, pl.cdiv(hw, tm))
    return pl.pallas_call(
        _resdowns_kernel,
        out_shape=jax.ShapeDtypeStruct((n, c_out, hw), out_dtype),
        grid_spec=pltpu.PrefetchScalarGridSpec(
            num_scalar_prefetch=0,
            grid=grid,
            in_specs=[
                # batch dim squeezed; only x is streamed, w/shift stay resident
                pl.BlockSpec((None, c_in, tm), lambda b, j: (b, 0, j)),
                pl.BlockSpec((c_out, c_in), lambda b, j: (0, 0)),
                pl.BlockSpec((c_out, 1), lambda b, j: (0, 0)),
            ],
            out_specs=pl.BlockSpec((None, c_out, tm), lambda b, j: (b, 0, j)),
        ),
        compiler_params=pltpu.CompilerParams(
            dimension_semantics=("parallel", "parallel"),
            vmem_limit_bytes=int(vmem_limit_bytes)),
    )(x_flat, w_folded, shift)


def res_down_s(x_nchw, conv_w, bn_gamma, bn_beta, bn_mean, bn_var,
               eps=1e-5, tm_max=8192, out_dtype=None):
    """Forward pass of ResDownS (inference BatchNorm).

    x_nchw : (N, C_in, H, W)   activations (f32 or bf16 -- never cast here)
    conv_w : (C_out, C_in)     1x1-conv weight (kernel_size=1, bias=False)
    bn_*   : (C_out,)          BatchNorm2d parameters / running stats
    out_dtype : output dtype; defaults to x.dtype.  Pass bf16 when the
                downstream consumer accepts it to halve the write stream.
    Returns (N, C_out, H', W') NCHW, cropped [4:-4, 4:-4] if W < 20.
    """
    n, c_in, h, w = x_nchw.shape
    c_out = conv_w.shape[0]
    if out_dtype is None:
        out_dtype = x_nchw.dtype

    # ---- crop BEFORE the conv (1x1 conv is pointwise in space) -------------
    if w < 20:
        x_nchw = x_nchw[:, :, 4:-4, 4:-4]
        h, w = h - 8, w - 8

    in_dtype = x_nchw.dtype

    # ---- fold BN (inference) into the weight + a per-channel shift ---------
    scale = bn_gamma.astype(jnp.float32) / jnp.sqrt(
        bn_var.astype(jnp.float32) + eps)                          # (C_out,)
    w_folded = (conv_w.astype(jnp.float32) * scale[:, None]).astype(in_dtype)
    shift = (bn_beta.astype(jnp.float32)
             - bn_mean.astype(jnp.float32) * scale).reshape(c_out, 1)

    # ---- NCHW -> (N, C_in, H*W): pure reshape, no transpose, no cast -------
    hw = h * w
    x_flat = x_nchw.reshape(n, c_in, hw)

    # ---- VMEM accounting & spatial (lane) tile choice -----------------------
    x_bytes = jnp.dtype(in_dtype).itemsize
    o_bytes = jnp.dtype(out_dtype).itemsize
    vmem_cap = _physical_vmem_bytes()           # 128 MiB v5e/v6e, 64 MiB v7x
    # Resident (double-buffered) weight + shift must be counted too.
    resident = 2 * (c_out * c_in * x_bytes + c_out * 4)
    # Use at most ~half of physical VMEM for this kernel's buffers; the rest
    # is headroom for Mosaic-internal scratch.
    stream_budget = max(2 * _LANE * (c_in * x_bytes + c_out * o_bytes),
                        vmem_cap // 2 - resident)
    per_lane = 2 * (c_in * x_bytes + c_out * o_bytes)   # dbl-buffered x + out
    cap_lanes = max(_LANE, (stream_budget // per_lane) // _LANE * _LANE)

    # tm is always a multiple of 128 (lane-dense, unmasked stores except for
    # the single tail block).
    tm = min(int(tm_max), int(cap_lanes), _round_up(hw, _LANE))
    tm = max(_LANE, (tm // _LANE) * _LANE)

    # v7x has 2 TensorCores: make sure there are >= 2 "parallel" grid steps.
    while n * pl.cdiv(hw, tm) < 2 and tm > _LANE:
        tm = max(_LANE, _round_up(tm // 2, _LANE))

    # Explicit scoped-VMEM limit: v5e defaults to ~16 MiB and v6e/v7x to
    # ~32 MiB, which would shrink the tile; ~3/4 of physical keeps headroom
    # (96 MiB on 128 MiB parts, 48 MiB on v7x's 64 MiB part).
    vmem_limit = min(vmem_cap - (8 << 20), (vmem_cap * 3) // 4)

    y_flat = _conv1x1_bn(x_flat, w_folded, shift, tm=tm,
                         out_dtype=out_dtype, vmem_limit_bytes=vmem_limit)

    # (N, C_out, H*W) -> NCHW: pure reshape, no transpose
    return y_flat.reshape(n, c_out, h, w)


def _reference(x_nchw, conv_w, bn_gamma, bn_beta, bn_mean, bn_var, eps=1e-5):
    # Pure-JAX reference matching the PyTorch module (conv -> BN -> crop).
    y = jnp.einsum('nchw,oc->nohw', x_nchw, conv_w)
    scale = (bn_gamma / jnp.sqrt(bn_var + eps)).reshape(1, -1, 1, 1)
    shift = (bn_beta - bn_mean * (bn_gamma / jnp.sqrt(bn_var + eps))
             ).reshape(1, -1, 1, 1)
    y = y * scale + shift
    if x_nchw.shape[3] < 20:
        y = y[:, :, 4:-4, 4:-4]
    return y


if __name__ == "__main__":
    key = jax.random.PRNGKey(0)
    k_x, k_w = jax.random.split(key)

    N, C_IN, C_OUT, H, W = 2, 4, 8, 16, 16
    x = jax.random.normal(k_x, (N, C_IN, H, W), dtype=jnp.float32)

    # Deterministic synthetic parameters (no checkpoint load).
    conv_w = jax.random.normal(k_w, (C_OUT, C_IN), dtype=jnp.float32) * 0.1
    bn_gamma = 1.0 + 0.05 * jnp.arange(C_OUT, dtype=jnp.float32)
    bn_beta = 0.01 * jnp.arange(C_OUT, dtype=jnp.float32)
    bn_mean = 0.02 * jnp.arange(C_OUT, dtype=jnp.float32)
    bn_var = 1.0 + 0.03 * jnp.arange(C_OUT, dtype=jnp.float32)

    fwd = jax.jit(functools.partial(res_down_s, eps=1e-5))
    out = fwd(x, conv_w, bn_gamma, bn_beta, bn_mean, bn_var)
    out = jax.block_until_ready(out)

    ref = _reference(x, conv_w, bn_gamma, bn_beta, bn_mean, bn_var)
    assert out.shape == (N, C_OUT, H - 8, W - 8), out.shape
    assert jnp.allclose(out, ref, atol=1e-5, rtol=1e-5), "mismatch vs reference"

    print("KERNEL_OK")
</pallas_src>

<mosaic_0001>
module attributes {stable_mosaic.version = 11 : i64} {
  func.func @_resdowns_kernel(%arg0: i32, %arg1: i32, %arg2: memref<1x4x128xf32, #tpu.memory_space<vmem>>, %arg3: memref<8x4xf32, #tpu.memory_space<vmem>>, %arg4: memref<8x1xf32, #tpu.memory_space<vmem>>, %arg5: memref<1x8x128xf32, #tpu.memory_space<vmem>>) attributes {dimension_semantics = [#tpu.dimension_semantics<parallel>, #tpu.dimension_semantics<parallel>], iteration_bounds = array<i64: 2, 1>, scalar_prefetch = 0 : i64, scratch_operands = 0 : i64, tpu.core_type = #tpu.core_type<tc>, window_params = [{transform_indices = @transform_0, window_bounds = array<i64: 1, 4, 128>}, {pipeline_mode = #tpu.pipeline_mode<synchronous>, transform_indices = @transform_1, window_bounds = array<i64: 8, 4>}, {pipeline_mode = #tpu.pipeline_mode<synchronous>, transform_indices = @transform_2, window_bounds = array<i64: 8, 1>}, {transform_indices = @transform_3, window_bounds = array<i64: 1, 8, 128>}]} {
    %c0 = arith.constant 0 : index
    %c0_0 = arith.constant 0 : index
    %0 = vector.load %arg3[%c0, %c0_0] : memref<8x4xf32, #tpu.memory_space<vmem>>, vector<8x4xf32>
    %c0_1 = arith.constant 0 : index
    %c0_2 = arith.constant 0 : index
    %c0_3 = arith.constant 0 : index
    %1 = vector.load %arg2[%c0_1, %c0_2, %c0_3] : memref<1x4x128xf32, #tpu.memory_space<vmem>>, vector<1x4x128xf32>
    %2 = vector.shape_cast %1 : vector<1x4x128xf32> to vector<4x128xf32>
    %cst = arith.constant dense<0.000000e+00> : vector<8x128xf32>
    %3 = tpu.matmul %0, %2, %cst {dimension_numbers = #tpu.dot_dimension_numbers<[1], [0], [0], [1], [0, 0, 1, 1], [], []>} : vector<8x4xf32>, vector<4x128xf32>, vector<8x128xf32> -> vector<8x128xf32>
    %c0_4 = arith.constant 0 : index
    %c0_5 = arith.constant 0 : index
    %4 = vector.load %arg4[%c0_4, %c0_5] : memref<8x1xf32, #tpu.memory_space<vmem>>, vector<8x1xf32>
    %5 = vector.broadcast %4 : vector<8x1xf32> to vector<8x128xf32>
    %6 = arith.addf %3, %5 : vector<8x128xf32>
    %c0_6 = arith.constant 0 : index
    %c0_7 = arith.constant 0 : index
    %c0_8 = arith.constant 0 : index
    %7 = vector.load %arg5[%c0_6, %c0_7, %c0_8] : memref<1x8x128xf32, #tpu.memory_space<vmem>>, vector<1x8x128xf32>
    %8 = vector.shape_cast %7 : vector<1x8x128xf32> to vector<8x128xf32>
    %9 = vector.shape_cast %6 : vector<8x128xf32> to vector<1x8x128xf32>
    tpu.vector_store %arg5[%c0_6, %c0_7, %c0_8], %9 {strides = array<i32>} : memref<1x8x128xf32, #tpu.memory_space<vmem>>, vector<1x8x128xf32>,
    return
  }
  func.func @transform_0(%arg0: i32, %arg1: i32) -> (i32, i32, i32) {
    %c0_i32 = arith.constant 0 : i32
    %c0_i32_0 = arith.constant 0 : i32
    return %arg0, %c0_i32, %arg1 : i32, i32, i32
  }
  func.func @transform_1(%arg0: i32, %arg1: i32) -> (i32, i32) {
    %c0_i32 = arith.constant 0 : i32
    %c0_i32_0 = arith.constant 0 : i32
    %c0_i32_1 = arith.constant 0 : i32
    return %c0_i32, %c0_i32_0 : i32, i32
  }
  func.func @transform_2(%arg0: i32, %arg1: i32) -> (i32, i32) {
    %c0_i32 = arith.constant 0 : i32
    %c0_i32_0 = arith.constant 0 : i32
    %c0_i32_1 = arith.constant 0 : i32
    return %c0_i32, %c0_i32_0 : i32, i32
  }
  func.func @transform_3(%arg0: i32, %arg1: i32) -> (i32, i32, i32) {
    %c0_i32 = arith.constant 0 : i32
    %c0_i32_0 = arith.constant 0 : i32
    return %arg0, %c0_i32, %arg1 : i32, i32, i32
  }
}

</mosaic_0001>

<bundles_post_ra>
// kernel: res_down_s.1
= control target key start
LH: loop header
LB: loop body
LE: loop exit
PB: predicated region body
PF: predicated region fallthrough
CT: control target
= control target key end

     0   :  { %s451_s12 = smov 0   ;;  %s453_s13 = smov 0   ;;  %s490_s0 = inlined_call_operand.vmem [shape: f32[2,4,64], index: 0, kind: input, shape index: {}]   ;;  %s491_s1 = inlined_call_operand.vmem [shape: f32[8,4], index: 1, kind: input, shape index: {}]   ;;  %s492_s2 = inlined_call_operand.vmem [shape: f32[8,1], index: 2, kind: input, shape index: {}]   ;;  %s493_s3 = inlined_call_operand.vmem [shape: f32[2,8,64], index: 3, kind: output, shape index: {}]  }
   0x1   :  { %s455_s14 = smov 0  }
   0x2 LB: > { %s25_s15 = sadd.s32 1, %s422_s13  ;;  %p362_p0 = scmp.ge.s32.totalorder %s426_s14, 1  ;;  %s426_s14 = sphi %s455_s14, %s13_s14   ;;  %s422_s13 = sphi %s453_s13, %s495_s13   ;;  %s418_s12 = sphi %s451_s12, %s494_s12  }
   0x3   : > { %p27_p1 = scmp.ge.s32.totalorder %s25_s15, 2  ;;  %p155_p2 = scmp.lt.s32.totalorder %s426_s14, 3 }
   0x5   : > { %s497_s15 = smov (%p27_p1, %s25_s15), 0  ;;  %p156_p3 = pnand %p362_p0, %p155_p2 }
   0x6   : > { %p183_p4 = scmp.lt.s32.totalorder (!%p156_p3), %s418_s12, 1 }
   0x7   : > { %159 = sbr.rel (%p156_p3) target bundleno = 213 (0xd5), region = 32 }
   0xc   : > { %v428_v0 = vmov 0.0   ;;  %vm429_vm0 = vmmov 0   ;;  %v199_v1 = vld [vmem:[%s492_s2] sm:$0xff]  ;;  %s499_s12 = smov (!%p183_p4, %s418_s12), 1  ;;  %v430_v2 = vmov 0   ;;  %vm209_vm1 = vcmask 1043456  }
   0xd   : > { %371 = vmatprep.subr.mxu0 %v428_v0  ;;  %373 = vmatprep.mubr.msk.f32.mxu0 %vm429_vm0, %v428_v0  ;;  %s363_s18 = sshll.u32 %s499_s12, 2  ;;  %v197_v3 = vld [vmem:[%s491_s1] sm:$0xff]  ;;  %vm205_vm2 = vcmask 31744   ;;  %s364_s24 = sshll.u32 %s499_s12, 3 }
   0xe   : > { %403 = vset.pattern.permute.xlu0 %v430_v2  ;;  %s189_s21 = scalar_lea.vmem %s490_s0, %s363_s18  ;;  %s196_s27 = scalar_lea.vmem %s493_s3, %s364_s24 }
   0xf   : > { %202 = vperm.xlu0 %403, %v199_v1   ;;  %v198_v4 = vld [vmem:[%s189_s21] sm:$0xf] }
  0x10   : > { %372 = vmatpush3.msk.msra.mxu0 %vm209_vm1, %v198_v4 }
  0x11   : > { %374 = vmatmul.mubr.msk.f32.vlgmr.msra.gmra.mxu0 %vm205_vm2, %v197_v3 }
  0x8a   : > { %v203_v5 = vpop.permute.xlu0 %202 }
  0xd1   : > { %v279_v6 = vpop.f32.mrf.mxu0 }
  0xd2   : > { %v280_v7 = vadd.f32 %v279_v6, %v203_v5 }
  0xd3   : > { %v375_v8 = vpop.f32.mrf.mxu0 }
  0xd4   : > { %283 = vst [vmem:[%s196_s27] sm:$0xff] %v280_v7 }
  0xd5 PF: > { %s13_s14 = sadd.s32 1, %s426_s14   ;;  %s494_s12 = smov %s422_s13 }
  0xd6   : > { %p10_p5 = scmp.ge.s32.totalorder %s13_s14, 4   ;;  %s495_s13 = smov %s497_s15 }
  0xd8   :  { %12 = sbr.rel (!%p10_p5) target bundleno = 2 (0x2), region = 62 }

</bundles_post_ra>
